<compile_context>
chip_gen: v5e
topology: v5e:2x2
jax: 0.10.0
libtpu: 0.0.40
codegen_flags: <defaults>
</compile_context>

<pallas_src>
import math

import jax
import jax.numpy as jnp
from jax import lax
from jax.experimental import pallas as pl
from jax.experimental.pallas import tpu as pltpu

LN_EPS = 1e-5  # PyTorch nn.LayerNorm default
_INV_SQRT2 = 0.7071067811865476


def _round_up(a, b):
    return (a + b - 1) // b * b


def _pick_tk(hidden, desired):
    """Largest hidden-chunk <= desired that divides hidden and is lane-legal."""
    if hidden <= desired:
        return hidden
    best = None
    t = 128
    while t <= desired:
        if hidden % t == 0:
            best = t
        t += 128
    return best if best is not None else hidden


def _device_config():
    """Per-generation tiling defaults and VMEM capacity."""
    kind = ""
    try:
        kind = jax.devices()[0].device_kind.lower()
    except Exception:
        pass
    if "v7" in kind:
        cfg = dict(tm=512, tk=256, cores=2, cap=64 << 20)
    elif "v6" in kind:
        cfg = dict(tm=512, tk=512, cores=1, cap=128 << 20)
    elif "v5p" in kind:
        cfg = dict(tm=512, tk=512, cores=2, cap=128 << 20)
    elif "v5" in kind:  # v5e / v5 lite
        cfg = dict(tm=512, tk=1024, cores=1, cap=128 << 20)
    else:  # unknown: conservative (assume small VMEM, 2 cores)
        cfg = dict(tm=256, tk=512, cores=2, cap=64 << 20)
    try:
        cfg["cap"] = int(pltpu.get_tpu_info().vmem_capacity_bytes)
    except Exception:
        pass
    return cfg


def _mlp_kernel(x_ref, gamma_ref, beta_ref, w1_ref, b1_ref, w2_ref, b2_ref,
                o_ref, y_ref, acc_ref):
    k = pl.program_id(1)

    # First hidden chunk of this token tile: LayerNorm once (f32 statistics),
    # cache normalized activations in the matmul dtype.
    @pl.when(k == 0)
    def _():
        x = x_ref[...].astype(jnp.float32)
        mean = jnp.mean(x, axis=-1, keepdims=True)
        centered = x - mean
        var = jnp.mean(centered * centered, axis=-1, keepdims=True)
        xhat = centered * lax.rsqrt(var + LN_EPS)
        y = (xhat * gamma_ref[...].astype(jnp.float32)
             + beta_ref[...].astype(jnp.float32))
        y_ref[...] = y.astype(y_ref.dtype)

    # Linear1 chunk (dim -> tk) on the MXU in the weights' native dtype.
    h = jnp.dot(y_ref[...], w1_ref[...], preferred_element_type=jnp.float32)
    h = h + b1_ref[...].astype(jnp.float32)
    # Exact (erf-based) GELU, matching nn.GELU() default; math kept in f32.
    # (tanh-approx GELU would move work to the EUP slot but changes numerics.)
    h = 0.5 * h * (1.0 + lax.erf(h * _INV_SQRT2))
    # Dropout is identity in eval mode.
    # TODO(synk): training-mode dropout (stochastic masking) not implemented.

    # Linear2 partial (tk -> dim), accumulated in f32. No zero-init: the first
    # chunk overwrites, later chunks accumulate (saves one tm*dim f32 RMW).
    part = jnp.dot(h.astype(w2_ref.dtype), w2_ref[...],
                   preferred_element_type=jnp.float32)

    @pl.when(k == 0)
    def _():
        acc_ref[...] = part

    @pl.when(k > 0)
    def _():
        acc_ref[...] += part

    @pl.when(k == pl.num_programs(1) - 1)
    def _():
        out = acc_ref[...] + b2_ref[...].astype(jnp.float32)
        o_ref[...] = out.astype(o_ref.dtype)


def mlp_forward(x, gamma, beta, w1, b1, w2, b2, *, tm=None, tk=None,
                out_dtype=None):
    """x: [..., dim] -> [..., dim]. Matmuls run in w1/w2's dtype (use bf16)."""
    cfg = _device_config()
    tm_req = int(tm) if tm is not None else cfg["tm"]
    tk_req = int(tk) if tk is not None else cfg["tk"]

    orig_shape = x.shape
    dim = orig_shape[-1]
    hidden = w1.shape[1]
    compute_dtype = w1.dtype
    out_dtype = out_dtype if out_dtype is not None else x.dtype

    x2d = x.reshape(-1, dim)
    # If weights are lower precision (bf16), stream activations at that
    # precision too (halves x-tile HBM traffic and VMEM). LN stats stay f32.
    if jnp.dtype(compute_dtype).itemsize < jnp.dtype(x2d.dtype).itemsize:
        x2d = x2d.astype(compute_dtype)
    m = x2d.shape[0]

    isz = lambda a: jnp.dtype(a.dtype).itemsize
    act_isz = isz(x2d)
    out_isz = jnp.dtype(out_dtype).itemsize
    w_isz = jnp.dtype(compute_dtype).itemsize
    c_isz = jnp.dtype(compute_dtype).itemsize

    def _footprint(tm_e, tk_e):
        # Double-buffered streaming tiles + constants + scratch + live f32
        # intermediates, with 1.5x slack for Mosaic internals.
        stream = 2 * (tm_e * dim * act_isz          # x tile
                      + dim * tk_e * w_isz          # w1 chunk
                      + tk_e * isz(b1)              # b1 chunk
                      + tk_e * dim * w_isz          # w2 chunk
                      + tm_e * dim * out_isz)       # out tile
        const = 2 * dim * (isz(gamma) + isz(beta) + isz(b2))
        scratch = tm_e * dim * (c_isz + 4)          # LN cache + f32 acc
        live = 3 * tm_e * tk_e * 4                  # GELU intermediates
        return (stream + const + scratch + live) * 3 // 2

    # Clamp everything to the chip's physical VMEM minus headroom.
    budget = max(cfg["cap"] - (8 << 20), 24 << 20)

    tk_eff = _pick_tk(hidden, tk_req)
    tm_cap = max(8, min(_round_up(tm_req, 8), _round_up(m, 8)))

    # Shrink tk first (no roofline cost), then tm, until the footprint fits.
    while _footprint(tm_cap, tk_eff) > budget:
        half_tk = tk_eff // 2
        if tk_eff > 128 and half_tk % 128 == 0 and hidden % half_tk == 0:
            tk_eff = half_tk
        elif tm_cap > 8:
            tm_cap = max(8, _round_up(tm_cap // 2, 8))
        else:
            break

    # Balanced token tiles (avoid a nearly-empty padded tile); on multi-core
    # chips make sure both TensorCores get work on the "parallel" axis.
    n_tiles = max(1, math.ceil(m / tm_cap))
    if cfg["cores"] > 1 and n_tiles % cfg["cores"] != 0 and m > 8 * cfg["cores"]:
        n_tiles = math.ceil(n_tiles / cfg["cores"]) * cfg["cores"]
    tm_eff = _round_up(math.ceil(m / n_tiles), 8)
    n_tiles = math.ceil(m / tm_eff)
    m_pad = n_tiles * tm_eff

    if m_pad != m:
        x2d = jnp.pad(x2d, ((0, m_pad - m), (0, 0)))

    grid = (n_tiles, hidden // tk_eff)

    gamma2 = gamma.reshape(1, dim)
    beta2 = beta.reshape(1, dim)
    b1_2 = b1.reshape(1, hidden)
    b2_2 = b2.reshape(1, dim)

    vmem_limit = int(min(max(_footprint(tm_eff, tk_eff) + (4 << 20), 16 << 20),
                         budget))

    out = pl.pallas_call(
        _mlp_kernel,
        out_shape=jax.ShapeDtypeStruct((m_pad, dim), out_dtype),
        grid_spec=pltpu.PrefetchScalarGridSpec(
            num_scalar_prefetch=0,
            grid=grid,
            in_specs=[
                pl.BlockSpec((tm_eff, dim), lambda i, k: (i, 0)),      # x tile
                pl.BlockSpec((1, dim), lambda i, k: (0, 0)),           # gamma
                pl.BlockSpec((1, dim), lambda i, k: (0, 0)),           # beta
                pl.BlockSpec((dim, tk_eff), lambda i, k: (0, k)),      # w1 chunk
                pl.BlockSpec((1, tk_eff), lambda i, k: (0, k)),        # b1 chunk
                pl.BlockSpec((tk_eff, dim), lambda i, k: (k, 0)),      # w2 chunk
                pl.BlockSpec((1, dim), lambda i, k: (0, 0)),           # b2
            ],
            out_specs=pl.BlockSpec((tm_eff, dim), lambda i, k: (i, 0)),
            scratch_shapes=[
                pltpu.VMEM((tm_eff, dim), compute_dtype),   # LayerNorm cache
                pltpu.VMEM((tm_eff, dim), jnp.float32),     # Linear2 accumulator
            ],
        ),
        compiler_params=pltpu.CompilerParams(
            dimension_semantics=("parallel", "arbitrary"),
            vmem_limit_bytes=vmem_limit),
    )(x2d, gamma2, beta2, w1, b1_2, w2, b2_2)

    if m_pad != m:
        out = out[:m]
    return out.reshape(orig_shape[:-1] + (dim,))


def _reference(x, gamma, beta, w1, b1, w2, b2):
    """Pure-JAX reference with identical (eval-mode) semantics."""
    xf = x.astype(jnp.float32)
    mean = jnp.mean(xf, axis=-1, keepdims=True)
    var = jnp.mean((xf - mean) ** 2, axis=-1, keepdims=True)
    y = (xf - mean) / jnp.sqrt(var + LN_EPS) * gamma + beta
    h = y @ w1 + b1
    h = 0.5 * h * (1.0 + lax.erf(h / jnp.sqrt(2.0)))
    return (h @ w2 + b2).astype(x.dtype)


if __name__ == "__main__":
    # Small shapes consistent with the module: tokens=(batch*seq), dim, hidden.
    batch, seq, dim, hidden = 2, 8, 16, 32
    key = jax.random.PRNGKey(0)
    kx, kg, kb, kw1, kb1, kw2, kb2 = jax.random.split(key, 7)

    x = jax.random.normal(kx, (batch, seq, dim), dtype=jnp.float32)

    gamma = 1.0 + 0.1 * jax.random.normal(kg, (dim,), dtype=jnp.float32)
    beta = 0.1 * jax.random.normal(kb, (dim,), dtype=jnp.float32)
    w1 = jax.random.normal(kw1, (dim, hidden), dtype=jnp.float32) * dim ** -0.5
    b1 = 0.01 * jax.random.normal(kb1, (hidden,), dtype=jnp.float32)
    w2 = jax.random.normal(kw2, (hidden, dim), dtype=jnp.float32) * hidden ** -0.5
    b2 = 0.01 * jax.random.normal(kb2, (dim,), dtype=jnp.float32)

    run = jax.jit(mlp_forward)

    # f32-weight path (tight check vs the f32 reference).
    out = jax.block_until_ready(run(x, gamma, beta, w1, b1, w2, b2))
    ref = _reference(x, gamma, beta, w1, b1, w2, b2)
    assert out.shape == x.shape
    assert jnp.allclose(out, ref, atol=1e-4, rtol=1e-4), "f32 mismatch vs reference"

    # bf16-weight path: bf16 activations + MXU-native matmuls, f32 accumulation.
    w1b, w2b = w1.astype(jnp.bfloat16), w2.astype(jnp.bfloat16)
    out_bf16 = jax.block_until_ready(run(x, gamma, beta, w1b, b1, w2b, b2))
    ref_bf16 = _reference(x, gamma, beta, w1b.astype(jnp.float32), b1,
                          w2b.astype(jnp.float32), b2)
    assert out_bf16.shape == x.shape
    assert jnp.allclose(out_bf16, ref_bf16, atol=0.1, rtol=0.1), "bf16 mismatch"

    print("KERNEL_OK")
</pallas_src>

<mosaic_0001>
module attributes {stable_mosaic.version = 11 : i64} {
  func.func @_mlp_kernel(%arg0: i32, %arg1: i32, %arg2: memref<16x16xf32, #tpu.memory_space<vmem>>, %arg3: memref<1x16xf32, #tpu.memory_space<vmem>>, %arg4: memref<1x16xf32, #tpu.memory_space<vmem>>, %arg5: memref<16x32xf32, #tpu.memory_space<vmem>>, %arg6: memref<1x32xf32, #tpu.memory_space<vmem>>, %arg7: memref<32x16xf32, #tpu.memory_space<vmem>>, %arg8: memref<1x16xf32, #tpu.memory_space<vmem>>, %arg9: memref<16x16xf32, #tpu.memory_space<vmem>>, %arg10: memref<16x16xf32, #tpu.memory_space<vmem>>, %arg11: memref<16x16xf32, #tpu.memory_space<vmem>>) attributes {dimension_semantics = [#tpu.dimension_semantics<parallel>, #tpu.dimension_semantics<arbitrary>], iteration_bounds = array<i64: 1, 1>, scalar_prefetch = 0 : i64, scratch_operands = 2 : i64, tpu.core_type = #tpu.core_type<tc>, window_params = [{transform_indices = @transform_0, window_bounds = array<i64: 16, 16>}, {pipeline_mode = #tpu.pipeline_mode<synchronous>, transform_indices = @transform_1, window_bounds = array<i64: 1, 16>}, {pipeline_mode = #tpu.pipeline_mode<synchronous>, transform_indices = @transform_2, window_bounds = array<i64: 1, 16>}, {transform_indices = @transform_3, window_bounds = array<i64: 16, 32>}, {transform_indices = @transform_4, window_bounds = array<i64: 1, 32>}, {transform_indices = @transform_5, window_bounds = array<i64: 32, 16>}, {pipeline_mode = #tpu.pipeline_mode<synchronous>, transform_indices = @transform_6, window_bounds = array<i64: 1, 16>}, {transform_indices = @transform_7, window_bounds = array<i64: 16, 16>}]} {
    %c0_i32 = arith.constant 0 : i32
    %0 = arith.cmpi eq, %arg1, %c0_i32 : i32
    %1 = arith.extui %0 : i1 to i32
    %c0_i32_0 = arith.constant 0 : i32
    %2 = arith.cmpi ne, %1, %c0_i32_0 : i32
    scf.if %2 {
      %c0_18 = arith.constant 0 : index
      %c0_19 = arith.constant 0 : index
      %28 = vector.load %arg2[%c0_18, %c0_19] : memref<16x16xf32, #tpu.memory_space<vmem>>, vector<16x16xf32>
      %cst_20 = arith.constant dense<0.000000e+00> : vector<16xf32>
      %29 = vector.multi_reduction <add>, %28, %cst_20 [1] : vector<16x16xf32> to vector<16xf32>
      %30 = vector.shape_cast %29 : vector<16xf32> to vector<16x1xf32>
      %cst_21 = arith.constant 1.600000e+01 : f32
      %31 = vector.broadcast %cst_21 : f32 to vector<16x1xf32>
      %32 = arith.divf %30, %31 : vector<16x1xf32>
      %33 = vector.broadcast %32 : vector<16x1xf32> to vector<16x16xf32>
      %34 = arith.subf %28, %33 : vector<16x16xf32>
      %35 = arith.mulf %34, %34 : vector<16x16xf32>
      %cst_22 = arith.constant dense<0.000000e+00> : vector<16xf32>
      %36 = vector.multi_reduction <add>, %35, %cst_22 [1] : vector<16x16xf32> to vector<16xf32>
      %37 = vector.shape_cast %36 : vector<16xf32> to vector<16x1xf32>
      %cst_23 = arith.constant 1.600000e+01 : f32
      %38 = vector.broadcast %cst_23 : f32 to vector<16x1xf32>
      %39 = arith.divf %37, %38 : vector<16x1xf32>
      %cst_24 = arith.constant 9.99999974E-6 : f32
      %40 = vector.broadcast %cst_24 : f32 to vector<16x1xf32>
      %41 = arith.addf %39, %40 : vector<16x1xf32>
      %42 = math.rsqrt %41 : vector<16x1xf32>
      %43 = vector.broadcast %42 : vector<16x1xf32> to vector<16x16xf32>
      %44 = arith.mulf %34, %43 : vector<16x16xf32>
      %c0_25 = arith.constant 0 : index
      %c0_26 = arith.constant 0 : index
      %45 = vector.load %arg3[%c0_25, %c0_26] : memref<1x16xf32, #tpu.memory_space<vmem>>, vector<1x16xf32>
      %46 = vector.broadcast %45 : vector<1x16xf32> to vector<16x16xf32>
      %47 = arith.mulf %44, %46 : vector<16x16xf32>
      %c0_27 = arith.constant 0 : index
      %c0_28 = arith.constant 0 : index
      %48 = vector.load %arg4[%c0_27, %c0_28] : memref<1x16xf32, #tpu.memory_space<vmem>>, vector<1x16xf32>
      %49 = vector.broadcast %48 : vector<1x16xf32> to vector<16x16xf32>
      %50 = arith.addf %47, %49 : vector<16x16xf32>
      %c0_29 = arith.constant 0 : index
      %c0_30 = arith.constant 0 : index
      %51 = vector.load %arg10[%c0_29, %c0_30] : memref<16x16xf32, #tpu.memory_space<vmem>>, vector<16x16xf32>
      tpu.vector_store %arg10[%c0_29, %c0_30], %50 {strides = array<i32>} : memref<16x16xf32, #tpu.memory_space<vmem>>, vector<16x16xf32>,
    } else {
    }
    %c0 = arith.constant 0 : index
    %c0_1 = arith.constant 0 : index
    %3 = vector.load %arg10[%c0, %c0_1] : memref<16x16xf32, #tpu.memory_space<vmem>>, vector<16x16xf32>
    %c0_2 = arith.constant 0 : index
    %c0_3 = arith.constant 0 : index
    %4 = vector.load %arg5[%c0_2, %c0_3] : memref<16x32xf32, #tpu.memory_space<vmem>>, vector<16x32xf32>
    %cst = arith.constant dense<0.000000e+00> : vector<16x32xf32>
    %5 = tpu.matmul %3, %4, %cst {dimension_numbers = #tpu.dot_dimension_numbers<[1], [0], [0], [1], [0, 0, 1, 1], [], []>} : vector<16x16xf32>, vector<16x32xf32>, vector<16x32xf32> -> vector<16x32xf32>
    %c0_4 = arith.constant 0 : index
    %c0_5 = arith.constant 0 : index
    %6 = vector.load %arg6[%c0_4, %c0_5] : memref<1x32xf32, #tpu.memory_space<vmem>>, vector<1x32xf32>
    %7 = vector.broadcast %6 : vector<1x32xf32> to vector<16x32xf32>
    %8 = arith.addf %5, %7 : vector<16x32xf32>
    %cst_6 = arith.constant 5.000000e-01 : f32
    %9 = vector.broadcast %cst_6 : f32 to vector<16x32xf32>
    %10 = arith.mulf %9, %8 : vector<16x32xf32>
    %cst_7 = arith.constant 0.707106769 : f32
    %11 = vector.broadcast %cst_7 : f32 to vector<16x32xf32>
    %12 = arith.mulf %8, %11 : vector<16x32xf32>
    %13 = math.erf %12 : vector<16x32xf32>
    %cst_8 = arith.constant 1.000000e+00 : f32
    %14 = vector.broadcast %cst_8 : f32 to vector<16x32xf32>
    %15 = arith.addf %14, %13 : vector<16x32xf32>
    %16 = arith.mulf %10, %15 : vector<16x32xf32>
    %c0_9 = arith.constant 0 : index
    %c0_10 = arith.constant 0 : index
    %17 = vector.load %arg7[%c0_9, %c0_10] : memref<32x16xf32, #tpu.memory_space<vmem>>, vector<32x16xf32>
    %cst_11 = arith.constant dense<0.000000e+00> : vector<16x16xf32>
    %18 = tpu.matmul %16, %17, %cst_11 {dimension_numbers = #tpu.dot_dimension_numbers<[1], [0], [0], [1], [0, 0, 1, 1], [], []>} : vector<16x32xf32>, vector<32x16xf32>, vector<16x16xf32> -> vector<16x16xf32>
    %c0_i32_12 = arith.constant 0 : i32
    %19 = arith.cmpi eq, %arg1, %c0_i32_12 : i32
    %20 = arith.extui %19 : i1 to i32
    %c0_i32_13 = arith.constant 0 : i32
    %21 = arith.cmpi ne, %20, %c0_i32_13 : i32
    scf.if %21 {
      %c0_18 = arith.constant 0 : index
      %c0_19 = arith.constant 0 : index
      %28 = vector.load %arg11[%c0_18, %c0_19] : memref<16x16xf32, #tpu.memory_space<vmem>>, vector<16x16xf32>
      tpu.vector_store %arg11[%c0_18, %c0_19], %18 {strides = array<i32>} : memref<16x16xf32, #tpu.memory_space<vmem>>, vector<16x16xf32>,
    } else {
    }
    %c0_i32_14 = arith.constant 0 : i32
    %22 = arith.cmpi sgt, %arg1, %c0_i32_14 : i32
    %23 = arith.extui %22 : i1 to i32
    %c0_i32_15 = arith.constant 0 : i32
    %24 = arith.cmpi ne, %23, %c0_i32_15 : i32
    scf.if %24 {
      %c0_18 = arith.constant 0 : index
      %c0_19 = arith.constant 0 : index
      %28 = vector.load %arg11[%c0_18, %c0_19] : memref<16x16xf32, #tpu.memory_space<vmem>>, vector<16x16xf32>
      %29 = arith.addf %28, %18 : vector<16x16xf32>
      %c0_20 = arith.constant 0 : index
      %c0_21 = arith.constant 0 : index
      %30 = vector.load %arg11[%c0_20, %c0_21] : memref<16x16xf32, #tpu.memory_space<vmem>>, vector<16x16xf32>
      tpu.vector_store %arg11[%c0_20, %c0_21], %29 {strides = array<i32>} : memref<16x16xf32, #tpu.memory_space<vmem>>, vector<16x16xf32>,
    } else {
    }
    %c0_i32_16 = arith.constant 0 : i32
    %25 = arith.cmpi eq, %arg1, %c0_i32_16 : i32
    %26 = arith.extui %25 : i1 to i32
    %c0_i32_17 = arith.constant 0 : i32
    %27 = arith.cmpi ne, %26, %c0_i32_17 : i32
    scf.if %27 {
      %c0_18 = arith.constant 0 : index
      %c0_19 = arith.constant 0 : index
      %28 = vector.load %arg11[%c0_18, %c0_19] : memref<16x16xf32, #tpu.memory_space<vmem>>, vector<16x16xf32>
      %c0_20 = arith.constant 0 : index
      %c0_21 = arith.constant 0 : index
      %29 = vector.load %arg8[%c0_20, %c0_21] : memref<1x16xf32, #tpu.memory_space<vmem>>, vector<1x16xf32>
      %30 = vector.broadcast %29 : vector<1x16xf32> to vector<16x16xf32>
      %31 = arith.addf %28, %30 : vector<16x16xf32>
      %c0_22 = arith.constant 0 : index
      %c0_23 = arith.constant 0 : index
      %32 = vector.load %arg9[%c0_22, %c0_23] : memref<16x16xf32, #tpu.memory_space<vmem>>, vector<16x16xf32>
      tpu.vector_store %arg9[%c0_22, %c0_23], %31 {strides = array<i32>} : memref<16x16xf32, #tpu.memory_space<vmem>>, vector<16x16xf32>,
    } else {
    }
    return
  }
  func.func @transform_0(%arg0: i32, %arg1: i32) -> (i32, i32) {
    %c0_i32 = arith.constant 0 : i32
    %c0_i32_0 = arith.constant 0 : i32
    return %arg0, %c0_i32 : i32, i32
  }
  func.func @transform_1(%arg0: i32, %arg1: i32) -> (i32, i32) {
    %c0_i32 = arith.constant 0 : i32
    %c0_i32_0 = arith.constant 0 : i32
    %c0_i32_1 = arith.constant 0 : i32
    return %c0_i32, %c0_i32_0 : i32, i32
  }
  func.func @transform_2(%arg0: i32, %arg1: i32) -> (i32, i32) {
    %c0_i32 = arith.constant 0 : i32
    %c0_i32_0 = arith.constant 0 : i32
    %c0_i32_1 = arith.constant 0 : i32
    return %c0_i32, %c0_i32_0 : i32, i32
  }
  func.func @transform_3(%arg0: i32, %arg1: i32) -> (i32, i32) {
    %c0_i32 = arith.constant 0 : i32
    %c0_i32_0 = arith.constant 0 : i32
    return %c0_i32, %arg1 : i32, i32
  }
  func.func @transform_4(%arg0: i32, %arg1: i32) -> (i32, i32) {
    %c0_i32 = arith.constant 0 : i32
    %c0_i32_0 = arith.constant 0 : i32
    return %c0_i32, %arg1 : i32, i32
  }
  func.func @transform_5(%arg0: i32, %arg1: i32) -> (i32, i32) {
    %c0_i32 = arith.constant 0 : i32
    %c0_i32_0 = arith.constant 0 : i32
    return %arg1, %c0_i32 : i32, i32
  }
  func.func @transform_6(%arg0: i32, %arg1: i32) -> (i32, i32) {
    %c0_i32 = arith.constant 0 : i32
    %c0_i32_0 = arith.constant 0 : i32
    %c0_i32_1 = arith.constant 0 : i32
    return %c0_i32, %c0_i32_0 : i32, i32
  }
  func.func @transform_7(%arg0: i32, %arg1: i32) -> (i32, i32) {
    %c0_i32 = arith.constant 0 : i32
    %c0_i32_0 = arith.constant 0 : i32
    return %arg0, %c0_i32 : i32, i32
  }
}

</mosaic_0001>

<bundles_post_ra>
// kernel: mlp_forward.1
= control target key start
LH: loop header
LB: loop body
LE: loop exit
PB: predicated region body
PF: predicated region fallthrough
CT: control target
= control target key end

     0   :  { %vm33_vm0 = vcmask 130048   ;;  %s474_s0 = inlined_call_operand.vmem [shape: f32[16,16], index: 0, kind: input, shape index: {}]   ;;  %s475_s1 = inlined_call_operand.vmem [shape: f32[1,16], index: 1, kind: input, shape index: {}]   ;;  %s476_s2 = inlined_call_operand.vmem [shape: f32[1,16], index: 2, kind: input, shape index: {}]   ;;  %s477_s3 = inlined_call_operand.vmem [shape: f32[16,32], index: 3, kind: input, shape index: {}]   ;;  %s478_s4 = inlined_call_operand.vmem [shape: f32[1,32], index: 4, kind: input, shape index: {}]   ;;  %s479_s5 = inlined_call_operand.vmem [shape: f32[32,16], index: 5, kind: input, shape index: {}]   ;;  %s480_s6 = inlined_call_operand.vmem [shape: f32[1,16], index: 6, kind: input, shape index: {}]   ;;  %s481_s7 = inlined_call_operand.hbm [shape: f32[16,16], index: 7, kind: output, shape index: {}]  }
   0x1   :  { %v32_v0 = vld [vmem:[%s474_s0 + $0x8] sm:$0xff] }
   0x2   :  { %v37_v1 = vsel %vm33_vm0, %v32_v0, 0.0 }
   0x3   :  { %38 = vadd.xlane.f32.xlu0 %v37_v1 }
   0x4   :  { %12 = vsyncpa [#allocation5], 0  ;;  %v31_v2 = vld [vmem:[%s474_s0] sm:$0xff]  ;;  %v361_v4 = vmov 16.0   ;;  %v102_v23 = vld [vmem:[%s477_s3 + $0x8] sm:$0xff]  ;;  %s362_s19 = smov [#allocation4]  }
   0x5   :  { %v34_v3 = vsel %vm33_vm0, %v31_v2, 0.0  ;;  %325 = vrcp.f32 %v361_v4  ;;  %311 = vmatpush.msra.mxu3 %v102_v23  ;;  %128 = vmatpush.msra.mxu0 %v102_v23  ;;  %v101_v25 = vld [vmem:[%s477_s3] sm:$0xff]  ;;  %s291_s20 = sshll.u32 %s362_s19, 4  ;;  %s293_s23 = sshll.u32 %s481_s7, 4  ;;  %s292_s20 = int_to_ptr.vmem [resolvable:$true] %s291_s20  ;;  %s294_s23 = int_to_ptr.hbm [resolvable:$true] %s293_s23 }
   0x6   :  { %v321_v37 = vld [vmem:[%s475_s1] ss:$0 sm:$0xff]  ;;  %s363_s24 = smov 128   ;;  %s364_s25 = smov 8  }
   0x7   :  { %312 = vmatpush.msra.mxu3 %v101_v25  ;;  %129 = vmatpush.msra.mxu0 %v101_v25  ;;  %v322_v40 = vld [vmem:[%s476_s2] ss:$0 sm:$0xff] }
   0x8   :  { %v323_v53 = vld [vmem:[%s478_s4] ss:$0 sm:$0xff] }
   0x9   :  { %v225_v23 = vld [vmem:[%s479_s5] sm:$0xff] }
   0xb   :  { %35 = vadd.xlane.f32.xlu0 %v34_v3  ;;  %v326_v5 = vpop.eup %325 }
   0xc   :  { %v41_v6 = vmul.f32 16.0, %v326_v5  ;;  %vm45_vm1 = vweird.f32 %v326_v5 }
   0xe   :  { %v42_v7 = vsub.f32 1.0, %v41_v6 }
  0x10   :  { %v43_v8 = vmul.f32 %v326_v5, %v42_v7 }
  0x12   :  { %v44_v9 = vadd.f32 %v326_v5, %v43_v8 }
  0x14   :  { %v46_v10 = vsel %vm45_vm1, %v326_v5, %v44_v9  ;;  %vm229_vm1 = vcmask 261120  }
  0x76   :  { %v39_v11 = vpop.xlane.xlu0 %38 }
  0x77   :  { %v48_v12 = vmul.f32 %v46_v10, %v39_v11 }
  0x79   :  { %v50_v13 = vsub.f32 %v32_v0, %v48_v12 }
  0x7b   :  { %v52_v14 = vmul.f32 %v50_v13, %v50_v13 }
  0x7d   :  { %v56_v15 = vsel %vm33_vm0, %v52_v14, 0.0  ;;  %v228_v14 = vld [vmem:[%s479_s5 + $0x18] sm:$0xff] }
  0x7e   :  { %57 = vadd.xlane.f32.xlu1 %v56_v15  ;;  %v36_v16 = vpop.xlane.xlu0 %35  ;;  %313 = vmatpush.msra.mxu2 %v228_v14 }
  0x7f   :  { %v47_v17 = vmul.f32 %v46_v10, %v36_v16  ;;  %248 = vmatpush.msra.mxu1 %v228_v14  ;;  %v227_v16 = vld [vmem:[%s479_s5 + $0x10] sm:$0xff] }
  0x80   :  { %314 = vmatpush.msra.mxu2 %v227_v16 }
  0x81   :  { %v49_v18 = vsub.f32 %v31_v2, %v47_v17  ;;  %249 = vmatpush.msra.mxu1 %v227_v16 }
  0x83   :  { %v51_v19 = vmul.f32 %v49_v18, %v49_v18 }
  0x85   :  { %v53_v20 = vsel %vm33_vm0, %v51_v19, 0.0  ;;  %v226_v19 = vld [vmem:[%s479_s5 + $0x8] sm:$0xff] }
  0x86   :  { %54 = vadd.xlane.f32.xlu1 %v53_v20  ;;  %315 = vmatpush.msra.mxu2 %v226_v19 }
  0x87   :  { %250 = vmatpush.msra.mxu1 %v226_v19 }
  0x88   :  { %316 = vmatpush.msra.mxu2 %v225_v23 }
  0x89   :  { %251 = vmatpush.msra.mxu1 %v225_v23 }
  0xf1   :  { %v58_v21 = vpop.xlane.xlu1 %57 }
  0xf2   :  { %v60_v22 = vmul.f32 %v58_v21, %v46_v10 }
  0xf4   :  { %v62_v24 = vadd.f32 1e-05, %v60_v22 }
  0xf6   :  { %327 = vrsqrt.f32 %v62_v24  ;;  %vm79_vm3 = vweird.f32 %v62_v24 }
  0xf9   :  { %v55_v26 = vpop.xlane.xlu1 %54 }
  0xfa   :  { %v59_v27 = vmul.f32 %v55_v26, %v46_v10 }
  0xfc   :  { %v328_v28 = vpop.eup %327  ;;  %v61_v29 = vadd.f32 1e-05, %v59_v27 }
  0xfd   :  { %v74_v30 = vmul.f32 %v328_v28, %v62_v24  ;;  %vm80_vm2 = vweird.f32 %v328_v28 }
  0xfe   :  { %329 = vrsqrt.f32 %v61_v29  ;;  %vm81_vm4 = vmor %vm79_vm3, %vm80_vm2  ;;  %vm69_vm6 = vweird.f32 %v61_v29 }
  0xff   :  { %v75_v31 = vmul.f32 %v328_v28, %v74_v30 }
 0x101   :  { %v76_v32 = vmul.f32 0.5, %v75_v31 }
 0x103   :  { %v77_v33 = vsub.f32 1.5, %v76_v32 }
 0x104   :  { %v330_v34 = vpop.eup %329 }
 0x105   :  { %v78_v35 = vmul.f32 %v328_v28, %v77_v33  ;;  %v64_v36 = vmul.f32 %v330_v34, %v61_v29  ;;  %vm70_vm5 = vweird.f32 %v330_v34 }
 0x106   :  { %vm71_vm7 = vmor %vm69_vm6, %vm70_vm5 }
 0x107   :  { %v82_v38 = vsel %vm81_vm4, %v328_v28, %v78_v35  ;;  %v65_v39 = vmul.f32 %v330_v34, %v64_v36 }
 0x108   :  { %v84_v41 = vmul.f32 %v82_v38, %v50_v13 }
 0x109   :  { %v66_v42 = vmul.f32 0.5, %v65_v39 }
 0x10a   :  { %v90_v43 = vmul.f32 %v321_v37, %v84_v41 }
 0x10b   :  { %v67_v44 = vsub.f32 1.5, %v66_v42 }
 0x10c   :  { %v96_v45 = vadd.f32 %v322_v40, %v90_v43 }
 0x10d   :  { %v68_v46 = vmul.f32 %v330_v34, %v67_v44 }
 0x10e   :  { %98 = vst.msk [vmem:[#allocation2 + $0x8] sm:$0xff] %vm33_vm0, %v96_v45 }
 0x10f   :  { %v72_v47 = vsel %vm71_vm7, %v330_v34, %v68_v46 }
 0x110   :  { %v83_v48 = vmul.f32 %v72_v47, %v49_v18 }
 0x112   :  { %v89_v49 = vmul.f32 %v321_v37, %v83_v48 }
 0x114   :  { %v95_v50 = vadd.f32 %v322_v40, %v89_v49 }
 0x115   :  { %v100_v51 = vld [vmem:[#allocation2 + $0x8] sm:$0xff] }
 0x116   :  { %97 = vst.msk [vmem:[#allocation2] sm:$0xff] %vm33_vm0, %v95_v50  ;;  %306 = vmatmul.msk.f32.vlgmr.msra.gmra.mxu3 %vm33_vm0, %v100_v51 }
 0x11d   :  { %v99_v52 = vld [vmem:[#allocation2] sm:$0xff] }
 0x11e   :  { %305 = vmatmul.msk.f32.vlgmr.msra.gmra.mxu0 %vm33_vm0, %v99_v52 }
 0x199   :  { %v134_v54 = vpop.f32.mrf.mxu3 }
 0x19a   :  { %v434_v55 = vadd.f32 %v323_v53, %v134_v54 }
 0x19b   :  { %v131_v56 = vpop.f32.mrf.mxu0 }
 0x19c   :  { %v437_v57 = vmul.f32 0.70710677, %v434_v55  ;;  %v439_v58 = vadd.f32 %v323_v53, %v131_v56 }
 0x19e   :  { %v181_v59 = vmul.f32 %v437_v57, %v437_v57  ;;  %v444_v60 = vmul.f32 0.70710677, %v439_v58 }
 0x1a0   :  { %v182_v61 = vmin.f32 %v181_v59, 16.0  ;;  %v141_v62 = vmul.f32 %v444_v60, %v444_v60 }
 0x1a2   :  { %v183_v63 = vmul.f32 2.1237322e-06, %v182_v61  ;;  %v194_v0 = vmul.f32 3.8918573e-05, %v182_v61  ;;  %v142_v1 = vmin.f32 %v141_v62, 16.0 }
 0x1a4   :  { %v184_v2 = vadd.f32 0.00028619796, %v183_v63  ;;  %v195_v3 = vadd.f32 0.001143296, %v194_v0  ;;  %v143_v4 = vmul.f32 2.1237322e-06, %v142_v1 }
 0x1a5   :  { %v154_v5 = vmul.f32 3.8918573e-05, %v142_v1 }
 0x1a6   :  { %v185_v6 = vmul.f32 %v184_v2, %v182_v61  ;;  %v196_v7 = vmul.f32 %v195_v3, %v182_v61  ;;  %v144_v8 = vadd.f32 0.00028619796, %v143_v4 }
 0x1a7   :  { %v155_v9 = vadd.f32 0.001143296, %v154_v5 }
 0x1a8   :  { %v197_v10 = vadd.f32 0.014752088, %v196_v7  ;;  %v145_v11 = vmul.f32 %v144_v8, %v142_v1  ;;  %v186_v12 = vadd.f32 0.0036580483, %v185_v6 }
 0x1a9   :  { %v156_v13 = vmul.f32 %v155_v9, %v142_v1  ;;  %v138_v9 = vmul.f32 0.5, %v434_v55  ;;  %v324_v55 = vld [vmem:[%s480_s6] ss:$0 sm:$0xff] }
 0x1aa   :  { %v198_v15 = vmul.f32 %v197_v10, %v182_v61  ;;  %v146_v17 = vadd.f32 0.0036580483, %v145_v11  ;;  %v187_v21 = vmul.f32 %v186_v12, %v182_v61  ;;  %v137_v12 = vmul.f32 0.5, %v439_v58 }
 0x1ab   :  { %v157_v18 = vadd.f32 0.014752088, %v156_v13 }
 0x1ac   :  { %v199_v20 = vadd.f32 0.112945676, %v198_v15  ;;  %v147_v25 = vmul.f32 %v146_v17, %v142_v1  ;;  %v188_v28 = vadd.f32 0.05243302, %v187_v21 }
 0x1ad   :  { %v158_v22 = vmul.f32 %v157_v18, %v142_v1 }
 0x1ae   :  { %v200_v24 = vmul.f32 %v199_v20, %v182_v61  ;;  %v148_v31 = vadd.f32 0.05243302, %v147_v25  ;;  %v189_v34 = vmul.f32 %v188_v28, %v182_v61 }
 0x1af   :  { %v159_v26 = vadd.f32 0.112945676, %v158_v22 }
 0x1b0   :  { %v201_v27 = vadd.f32 0.4994258, %v200_v24  ;;  %v149_v36 = vmul.f32 %v148_v31, %v142_v1  ;;  %v190_v38 = vadd.f32 0.18741608, %v189_v34 }
 0x1b1   :  { %v160_v29 = vmul.f32 %v159_v26, %v142_v1 }
 0x1b2   :  { %v202_v30 = vmul.f32 %v201_v27, %v182_v61  ;;  %v150_v39 = vadd.f32 0.18741608, %v149_v36  ;;  %v191_v41 = vmul.f32 %v190_v38, %v182_v61 }
 0x1b3   :  { %v161_v32 = vadd.f32 0.4994258, %v160_v29 }
 0x1b4   :  { %v203_v33 = vadd.f32 1.0, %v202_v30  ;;  %v151_v45 = vmul.f32 %v150_v39, %v142_v1  ;;  %v192_v48 = vadd.f32 1.1283791, %v191_v41 }
 0x1b5   :  { %v162_v35 = vmul.f32 %v161_v32, %v142_v1 }
 0x1b6   :  { %331 = vrcp.f32 %v203_v33  ;;  %v215_v46 = vand.u32 2147483648, %v203_v33  ;;  %v213_v50 = vand.u32 2147483647, %v203_v33  ;;  %vm209_vm9 = vweird.f32 %v203_v33 }
 0x1b7   :  { %v163_v37 = vadd.f32 1.0, %v162_v35  ;;  %v152_v53 = vadd.f32 1.1283791, %v151_v45  ;;  %v193_v62 = vmul.f32 %v192_v48, %v437_v57 }
 0x1b8   :  { %v216_v56 = vor.u32 1.1754944e-38, %v215_v46  ;;  %vm214_vm12 = vcmp.eq.f32.partialorder %v213_v50, 8.507059e+37 }
 0x1b9   :  { %333 = vrcp.f32 %v163_v37  ;;  %v175_v54 = vand.u32 2147483648, %v163_v37  ;;  %v173_v61 = vand.u32 2147483647, %v163_v37  ;;  %vm169_vm13 = vweird.f32 %v163_v37 }
 0x1ba   :  { %v153_v4 = vmul.f32 %v152_v53, %v444_v60 }
 0x1bb   :  { %v176_v3 = vor.u32 1.1754944e-38, %v175_v54  ;;  %vm174_vm15 = vcmp.eq.f32.partialorder %v173_v61, 8.507059e+37 }
 0x1bc   :  { %v332_v40 = vpop.eup %331 }
 0x1bd   :  { %v205_v42 = vmul.f32 %v332_v40, %v203_v33  ;;  %vm210_vm8 = vweird.f32 %v332_v40 }
 0x1be   :  { %vm211_vm10 = vmor %vm209_vm9, %vm210_vm8 }
 0x1bf   :  { %v334_v43 = vpop.eup %333  ;;  %v206_v44 = vsub.f32 1.0, %v205_v42 }
 0x1c0   :  { %v165_v47 = vmul.f32 %v334_v43, %v163_v37  ;;  %vm170_vm11 = vweird.f32 %v334_v43 }
 0x1c1   :  { %v207_v49 = vmul.f32 %v332_v40, %v206_v44  ;;  %vm171_vm14 = vmor %vm169_vm13, %vm170_vm11 }
 0x1c2   :  { %v166_v51 = vsub.f32 1.0, %v165_v47 }
 0x1c3   :  { %v208_v52 = vadd.f32 %v332_v40, %v207_v49 }
 0x1c4   :  { %v167_v59 = vmul.f32 %v334_v43, %v166_v51 }
 0x1c5   :  { %v212_v63 = vsel %vm211_vm10, %v332_v40, %v208_v52 }
 0x1c6   :  { %v217_v0 = vsel %vm214_vm12, %v216_v56, %v212_v63  ;;  %v168_v1 = vadd.f32 %v334_v43, %v167_v59 }
 0x1c7   :  { %v218_v2 = vmul.f32 %v217_v0, %v193_v62 }
 0x1c8   :  { %v172_v5 = vsel %vm171_vm14, %v334_v43, %v168_v1 }
 0x1c9   :  { %v177_v6 = vsel %vm174_vm15, %v176_v3, %v172_v5  ;;  %v308_v7 = vclamps-f32 %v218_v2, 1.0 }
 0x1ca   :  { %v178_v8 = vmul.f32 %v177_v6, %v153_v4 }
 0x1cb   :  { %v222_v10 = vadd.f32 1.0, %v308_v7 }
 0x1cc   :  { %v307_v57 = vclamps-f32 %v178_v8, 1.0 }
 0x1cd   :  { %v224_v11 = vmul.f32 %v222_v10, %v138_v9 }
 0x1ce   :  { %v221_v13 = vadd.f32 1.0, %v307_v57 }
 0x1cf   :  { %310 = vmatmul.msk.f32.vlgmr.msra.gmra.mxu2 %vm229_vm1, %v224_v11 }
 0x1d0   :  { %v223_v14 = vmul.f32 %v221_v13, %v137_v12 }
 0x1d2   :  { %309 = vmatmul.msk.f32.vlgmr.msra.gmra.mxu1 %vm229_vm1, %v223_v14 }
 0x24f   :  { %v253_v15 = vpop.f32.mrf.mxu1 }
 0x250   :  { %262 = vst.msk [vmem:[#allocation3] sm:$0xff] %vm33_vm0, %v253_v15 }
 0x252   :  { %v256_v60 = vpop.f32.mrf.mxu2 }
 0x253   :  { %263 = vst.msk [vmem:[#allocation3 + $0x8] sm:$0xff] %vm33_vm0, %v256_v60 }
 0x257   :  { %v277_v16 = vld [vmem:[#allocation3] sm:$0xff] }
 0x258   :  { %v283_v58 = vadd.f32 %v324_v55, %v277_v16 }
 0x25a   :  { %v278_v17 = vld [vmem:[#allocation3 + $0x8] sm:$0xff]  ;;  %285 = vst.msk [vmem:[#allocation4] sm:$0xff] %vm33_vm0, %v283_v58 }
 0x25b   :  { %v284_v18 = vadd.f32 %v324_v55, %v278_v17 }
 0x25d   :  { %286 = vst.msk [vmem:[#allocation4 + $0x8] sm:$0xff] %vm33_vm0, %v284_v18 }
 0x25e   :  { %299 = dma.vmem_to_hbm [thread:$0]  %s292_s20, 256, %s294_s23, [#allocation5], %s363_s24, %s363_s24, %s364_s25  }
 0x25f   :  { %359 = dma.done.wait [#allocation5], 256  }
 0x260   :  { %360 = vsyncadd [#allocation5], 4294967040 }
 0x261   :  { %304 = vsyncpa [#allocation5], 1 }

</bundles_post_ra>
